<compile_context>
chip_gen: v5e
topology: v5e:2x2
jax: 0.10.0
libtpu: 0.0.40
codegen_flags: <defaults>
</compile_context>

<pallas_src>
import functools
import math
from typing import NamedTuple

import jax
import jax.numpy as jnp
from jax import lax
from jax.experimental import pallas as pl
from jax.experimental.pallas import tpu as pltpu

_EPS = 1e-5  # PyTorch BatchNorm default eps


# --------------------------- device-dependent constants -------------------- #
def _device_kind():
    try:
        return jax.devices()[0].device_kind.lower()
    except Exception:
        return ""


_KIND = _device_kind()
_IS_V5E = ("v5 lite" in _KIND) or ("v5e" in _KIND) or ("v5litepod" in _KIND)
_IS_V7X = ("v7" in _KIND) or ("7x" in _KIND)
_TN_MAX = 128 if _IS_V5E else 256          # v5e MXU is 4x128x128
_TM_MAX = 512 if _IS_V7X else 1024         # v7x has 64 MiB VMEM/TC; v5e/v6e have 128 MiB


# --------------------------- small helpers --------------------------------- #
def _round_up(x, m):
    return ((x + m - 1) // m) * m


def _pick_tk(K):
    """(tk, Kp): tk divides Kp, minimal K padding, single k-step when reasonable."""
    Kp = _round_up(K, 128)
    if Kp <= 1024:
        return Kp, Kp
    best_tk, best_kp = None, None
    for tk in (512, 384, 256, 128):        # descending => prefer larger tk on ties
        kp = _round_up(K, tk)
        if best_kp is None or kp < best_kp:
            best_tk, best_kp = tk, kp
    return best_tk, best_kp


def _pick_tm(M):
    """(tm, Mp): tm multiple of 16 (bf16 sublane packing), minimal M padding."""
    Mp = _round_up(M, 16)
    if Mp <= _TM_MAX:
        return Mp, Mp
    steps = -(-Mp // _TM_MAX)
    tm = _round_up(-(-Mp // steps), 16)
    return tm, tm * steps


def _pick_tn(Np, n_i_tiles):
    tn = _TN_MAX if Np % _TN_MAX == 0 else 128
    # v7x has two TensorCores: when M collapses to a single tile, make sure the
    # parallel j extent is >= 2 whenever the layer is wide enough.
    if _IS_V7X and n_i_tiles == 1 and Np // tn < 2 and Np >= 256:
        tn = 128
    return tn


def _vmem_limit(tm, tk, tn, has_res, multi_k):
    # double-buffered bf16 X/W/out (+ residual) tiles + optional f32 accumulator
    need = 2 * (tm * tk * 2) + 2 * (tk * tn * 2) + 2 * (tn * 4) + 2 * (tm * tn * 2)
    if has_res:
        need += 2 * (tm * tn * 2)
    if multi_k:
        need += tm * tn * 4
    limit = need * 2 + (8 << 20)            # headroom for compiler scratch
    return int(min(max(limit, 16 << 20), 48 << 20))   # safe for v7x's 64 MiB/TC


# ----------------------------- Pallas kernel ------------------------------- #
def _mm_fused_kernel(*refs, relu, has_res, n_k):
    """o(bf16) = relu( X @ W + shift [+ residual] ); f32 accumulation on the MXU."""
    if n_k > 1:
        acc_ref = refs[-1]
        refs = refs[:-1]
    if has_res:
        x_ref, w_ref, b_ref, r_ref, o_ref = refs
    else:
        x_ref, w_ref, b_ref, o_ref = refs
        r_ref = None

    prod = jnp.dot(x_ref[...], w_ref[...], preferred_element_type=jnp.float32)

    def _finish(acc):
        y = acc + b_ref[...]
        if has_res:
            y = y + r_ref[...].astype(jnp.float32)
        if relu:
            y = jnp.maximum(y, 0.0)
        o_ref[...] = y.astype(o_ref.dtype)

    if n_k == 1:
        _finish(prod)                       # no scratch, no zero-init, single store
    else:
        k = pl.program_id(2)

        @pl.when(k == 0)
        def _():
            acc_ref[...] = prod

        @pl.when(jnp.logical_and(k > 0, k < n_k - 1))
        def _():
            acc_ref[...] = acc_ref[...] + prod

        @pl.when(k == n_k - 1)
        def _():
            _finish(acc_ref[...] + prod)


def _fused_matmul(xp, layer, M, *, relu, res=None):
    """xp: (Mp, Kp) bf16 zero-padded column matrix. Returns (Mp, Np) bf16."""
    Mp, Kp = xp.shape
    assert Kp == layer.Kp and layer.w.shape == (layer.Kp, layer.Np)
    tm, mp_chk = _pick_tm(M)
    assert mp_chk == Mp, (M, Mp, mp_chk)
    n_i = Mp // tm
    tn = _pick_tn(layer.Np, n_i)
    tk = layer.tk
    n_k = Kp // tk
    has_res = res is not None

    args = [xp, layer.w, layer.shift]
    in_specs = [
        pl.BlockSpec((tm, tk), lambda i, j, k: (i, k)),   # X (bf16)
        pl.BlockSpec((tk, tn), lambda i, j, k: (k, j)),   # W (bf16, BN scale folded in)
        pl.BlockSpec((1, tn), lambda i, j, k: (0, j)),    # shift (f32)
    ]
    if has_res:
        assert res.shape == (Mp, layer.Np)
        args.append(res)
        in_specs.append(pl.BlockSpec((tm, tn), lambda i, j, k: (i, j)))  # residual (bf16)

    scratch = [pltpu.VMEM((tm, tn), jnp.float32)] if n_k > 1 else []

    kernel = functools.partial(_mm_fused_kernel, relu=relu, has_res=has_res, n_k=n_k)
    return pl.pallas_call(
        kernel,
        out_shape=jax.ShapeDtypeStruct((Mp, layer.Np), jnp.bfloat16),
        grid_spec=pltpu.PrefetchScalarGridSpec(
            num_scalar_prefetch=0,
            grid=(n_i, layer.Np // tn, n_k),              # reduction axis last
            in_specs=in_specs,
            out_specs=pl.BlockSpec((tm, tn), lambda i, j, k: (i, j)),
            scratch_shapes=scratch,
        ),
        compiler_params=pltpu.CompilerParams(
            dimension_semantics=("parallel", "parallel", "arbitrary"),
            vmem_limit_bytes=_vmem_limit(tm, tk, tn, has_res, n_k > 1),
        ),
    )(*args)


# ------------------------------ Activation layout -------------------------- #
class Act(NamedTuple):
    """bf16 activation kept in padded GEMM layout: flat is (Mp, Np); M=n*h*w rows and c cols are valid."""
    flat: jax.Array
    n: int
    h: int
    w: int
    c: int


def _act_to_4d(a):
    M = a.n * a.h * a.w
    return a.flat[:M, :a.c].reshape(a.n, a.h, a.w, a.c)


def _act_from_4d(x4):
    n, h, w, c = x4.shape
    M = n * h * w
    _, Mp = _pick_tm(M)
    Np = _round_up(c, 128)
    flat = x4.astype(jnp.bfloat16).reshape(M, c)
    if Mp > M or Np > c:
        flat = jnp.pad(flat, ((0, Mp - M), (0, Np - c)))
    return Act(flat, n, h, w, c)


def _im2col_nhwc(x, kh, kw, stride, padding, Kp):
    """bf16 NHWC -> (N*Ho*Wo, Kp) column matrix; K padding folded into the same pass."""
    x = x.astype(jnp.bfloat16)
    n, h, w, c = x.shape
    if padding > 0:
        x = jnp.pad(x, ((0, 0), (padding, padding), (padding, padding), (0, 0)))
    hp, wp = h + 2 * padding, w + 2 * padding
    ho = (hp - kh) // stride + 1
    wo = (wp - kw) // stride + 1
    if kh == 1 and kw == 1:
        if stride > 1:
            x = x[:, ::stride, ::stride, :]
        col = x.reshape(n * ho * wo, c)
        if Kp > c:
            col = jnp.pad(col, ((0, 0), (0, Kp - c)))
        return col, ho, wo
    cols = [x[:, i:i + stride * ho:stride, j:j + stride * wo:stride, :]
            for i in range(kh) for j in range(kw)]
    K = kh * kw * c
    if Kp > K:
        cols.append(jnp.zeros((n, ho, wo, Kp - K), x.dtype))
    col = jnp.concatenate(cols, axis=-1)              # (N, Ho, Wo, Kp)
    return col.reshape(n * ho * wo, Kp), ho, wo


def conv_fused(x, layer, *, relu, residual=None):
    """Conv2d -> folded eval BatchNorm -> optional residual add -> optional ReLU.

    x is an Act (padded bf16 GEMM layout) or an NHWC array. Returns an Act.
    1x1 stride-1 convs consume the padded flat layout directly (no slice / reshape / re-pad).
    """
    res_flat = residual.flat if residual is not None else None
    if isinstance(x, Act):
        if (layer.kh == 1 and layer.kw == 1 and layer.stride == 1
                and x.flat.shape[1] == layer.Kp):
            M = x.n * x.h * x.w
            y = _fused_matmul(x.flat, layer, M, relu=relu, res=res_flat)
            return Act(y, x.n, x.h, x.w, layer.N)
        x4 = _act_to_4d(x)
    else:
        x4 = x
    # TODO(synk): 3x3 convs still materialize a bf16 im2col column matrix; an implicit-GEMM
    # variant (taps as a grid axis with Element-offset X blocks) would remove it for stride 1.
    col, ho, wo = _im2col_nhwc(x4, layer.kh, layer.kw, layer.stride, layer.pad, layer.Kp)
    n = x4.shape[0]
    M = n * ho * wo
    _, Mp = _pick_tm(M)
    if Mp > M:
        col = jnp.pad(col, ((0, Mp - M), (0, 0)))
    y = _fused_matmul(col, layer, M, relu=relu, res=res_flat)
    return Act(y, n, ho, wo, layer.N)


def bottleneck_forward(x, blk):
    """torchvision ResNet Bottleneck (eval BN); residual add + final ReLU fused into c3's epilogue."""
    if 'ds' in blk:
        identity = conv_fused(x, blk['ds'], relu=False)
    else:
        identity = x if isinstance(x, Act) else _act_from_4d(x)
    out = conv_fused(x, blk['c1'], relu=True)
    out = conv_fused(out, blk['c2'], relu=True)
    return conv_fused(out, blk['c3'], relu=True, residual=identity)


# --------------------------- Parameter generation --------------------------- #
@jax.tree_util.register_pytree_node_class
class ConvLayer:
    """Folded conv+BN: w is (Kp, Np) bf16 with the BN scale folded in; shift is (1, Np) f32."""

    def __init__(self, w, shift, K, Kp, N, Np, kh, kw, stride, pad, tk):
        self.w, self.shift = w, shift
        self.K, self.Kp, self.N, self.Np = K, Kp, N, Np
        self.kh, self.kw, self.stride, self.pad, self.tk = kh, kw, stride, pad, tk

    def tree_flatten(self):
        return ((self.w, self.shift),
                (self.K, self.Kp, self.N, self.Np,
                 self.kh, self.kw, self.stride, self.pad, self.tk))

    @classmethod
    def tree_unflatten(cls, aux, children):
        return cls(children[0], children[1], *aux)


class ParamGen:
    def __init__(self, key):
        self._key = key

    def _next(self):
        self._key, k = jax.random.split(self._key)
        return k

    def conv(self, cout, cin, kh, kw):
        fan_in = cin * kh * kw
        std = math.sqrt(2.0 / fan_in)                 # kaiming fan_in (ReLU gain)
        return jax.random.normal(self._next(), (cout, cin, kh, kw), jnp.float32) * std

    def bn(self, c):
        # (gamma, beta, running_mean, running_var) -- eval-mode statistics
        return (jnp.ones((c,), jnp.float32), jnp.zeros((c,), jnp.float32),
                jnp.zeros((c,), jnp.float32), jnp.ones((c,), jnp.float32))


def _fold_conv_bn(w, conv_bias, bn, stride, padding):
    """Fold conv bias + eval BN into (weights, shift); transpose/pad/cast once at init."""
    cout, cin, kh, kw = w.shape
    K, N = kh * kw * cin, cout
    w2 = jnp.transpose(w, (2, 3, 1, 0)).reshape(K, N)     # matches im2col (i,j,c) ordering
    gamma, beta, mean, var = bn
    scale = gamma / jnp.sqrt(var + _EPS)
    shift = beta - mean * scale
    if conv_bias is not None:
        shift = shift + conv_bias * scale
    w2 = w2 * scale[None, :]                              # fold BN scale into the weights
    tk, Kp = _pick_tk(K)
    Np = _round_up(N, 128)
    return ConvLayer(
        w=jnp.pad(w2, ((0, Kp - K), (0, Np - N))).astype(jnp.bfloat16),
        shift=jnp.pad(shift.reshape(1, -1), ((0, 0), (0, Np - N))).astype(jnp.float32),
        K=K, Kp=Kp, N=N, Np=Np, kh=kh, kw=kw, stride=stride, pad=padding, tk=tk)


def make_bottleneck(pg, inplanes, planes, stride, downsample):
    blk = {
        'c1': _fold_conv_bn(pg.conv(planes, inplanes, 1, 1), None, pg.bn(planes), 1, 0),
        'c2': _fold_conv_bn(pg.conv(planes, planes, 3, 3), None, pg.bn(planes), stride, 1),
        'c3': _fold_conv_bn(pg.conv(planes * 4, planes, 1, 1), None, pg.bn(planes * 4), 1, 0),
    }
    if downsample:
        blk['ds'] = _fold_conv_bn(pg.conv(planes * 4, inplanes, 1, 1), None,
                                  pg.bn(planes * 4), stride, 0)
    return blk


def make_layer(pg, inplanes, planes, blocks, stride):
    layer = [make_bottleneck(pg, inplanes, planes, stride, True)]
    for _ in range(blocks - 1):
        layer.append(make_bottleneck(pg, planes * 4, planes, 1, False))
    return layer


def init_params(key, last_stride=1):
    # self.base = ResNet(last_stride): standard ResNet-50 with layer4 stride = last_stride.
    pg = ParamGen(key)
    return {
        'conv1': _fold_conv_bn(pg.conv(64, 3, 7, 7), None, pg.bn(64), 2, 3),
        'layer1': make_layer(pg, 64, 64, 3, 1),
        'layer2': make_layer(pg, 256, 128, 4, 2),
        'layer3': make_layer(pg, 512, 256, 6, 2),
        'layer4': make_layer(pg, 1024, 512, 3, last_stride),
    }


# -------------------------------- Forward ----------------------------------- #
def resnet_builder_forward(x_nchw, p):
    """ResNetBuilder.forward, eval mode with num_classes=None: returns global_feat (N, 2048)."""
    x = jnp.transpose(x_nchw, (0, 2, 3, 1))               # NHWC end-to-end
    a = conv_fused(x, p['conv1'], relu=True)              # conv1 7x7/2 + BN + ReLU (bf16 out)
    x4 = _act_to_4d(a)
    x4 = lax.reduce_window(x4, jnp.asarray(-jnp.inf, dtype=x4.dtype), lax.max,
                           (1, 3, 3, 1), (1, 2, 2, 1),    # maxpool 3x3 / s2 / p1 (bf16)
                           [(0, 0), (1, 1), (1, 1), (0, 0)])
    act = x4
    for name in ('layer1', 'layer2', 'layer3', 'layer4'):
        for blk in p[name]:
            act = bottleneck_forward(act, blk)
    # F.avg_pool2d over the full spatial extent + view(N, -1)
    M = act.n * act.h * act.w
    feats = act.flat[:M, :act.c].astype(jnp.float32).reshape(act.n, act.h * act.w, act.c)
    # TODO(synk): the bottleneck/classifier head only runs in training with num_classes set;
    # eval-mode forward returns the 2048-d global feature, as implemented here.
    return jnp.mean(feats, axis=1)


if __name__ == "__main__":
    key = jax.random.PRNGKey(0)
    kx, kp = jax.random.split(key)
    # Small NCHW image consistent with the module (3-channel input); 64x64 gives a
    # 4x4 final feature map with last_stride=1.
    x = jax.random.normal(kx, (2, 3, 64, 64), jnp.float32)
    params = init_params(kp)

    # --- tolerance-asserted check of the fused kernel vs a pure-JAX reference ---------- #
    lyr = params['layer1'][0]['c3']                       # 1x1 conv, 64 -> 256, folded BN
    xc = jax.random.normal(jax.random.PRNGKey(1), (2, 4, 4, 64), jnp.float32)
    rc = jax.random.normal(jax.random.PRNGKey(2), (2, 4, 4, 256), jnp.float32)
    got = _act_to_4d(conv_fused(xc, lyr, relu=True,
                                residual=_act_from_4d(rc))).astype(jnp.float32)
    wf = lyr.w[:64, :256].astype(jnp.float32)             # BN scale already folded into w
    ref = jnp.maximum(
        xc.astype(jnp.bfloat16).astype(jnp.float32).reshape(-1, 64) @ wf
        + lyr.shift[0, :256]
        + rc.astype(jnp.bfloat16).astype(jnp.float32).reshape(-1, 256),
        0.0).reshape(2, 4, 4, 256)
    err = float(jnp.max(jnp.abs(got - ref)))
    tol = 0.02 * float(jnp.max(jnp.abs(ref))) + 0.02      # bf16 output quantization headroom
    assert err <= tol, (err, tol)

    # --- full forward ------------------------------------------------------------------- #
    fwd = jax.jit(resnet_builder_forward)
    feat = jax.block_until_ready(fwd(x, params))
    assert feat.shape == (2, 2048) and feat.dtype == jnp.float32
    assert bool(jnp.all(jnp.isfinite(feat)))
    print("KERNEL_OK")
</pallas_src>

<mosaic_0001>
module attributes {stable_mosaic.version = 11 : i64} {
  func.func @_mm_fused_kernel(%arg0: i32, %arg1: i32, %arg2: i32, %arg3: memref<32x128xbf16, #tpu.memory_space<vmem>>, %arg4: memref<128x256xbf16, #tpu.memory_space<vmem>>, %arg5: memref<1x256xf32, #tpu.memory_space<vmem>>, %arg6: memref<32x256xbf16, #tpu.memory_space<vmem>>, %arg7: memref<32x256xbf16, #tpu.memory_space<vmem>>) attributes {dimension_semantics = [#tpu.dimension_semantics<parallel>, #tpu.dimension_semantics<parallel>, #tpu.dimension_semantics<arbitrary>], iteration_bounds = array<i64: 1, 1, 1>, scalar_prefetch = 0 : i64, scratch_operands = 0 : i64, tpu.core_type = #tpu.core_type<tc>, window_params = [{transform_indices = @transform_0, window_bounds = array<i64: 32, 128>}, {transform_indices = @transform_1, window_bounds = array<i64: 128, 256>}, {transform_indices = @transform_2, window_bounds = array<i64: 1, 256>}, {transform_indices = @transform_3, window_bounds = array<i64: 32, 256>}, {transform_indices = @transform_4, window_bounds = array<i64: 32, 256>}]} {
    %c0 = arith.constant 0 : index
    %c0_0 = arith.constant 0 : index
    %0 = vector.load %arg3[%c0, %c0_0] : memref<32x128xbf16, #tpu.memory_space<vmem>>, vector<32x128xbf16>
    %c0_1 = arith.constant 0 : index
    %c0_2 = arith.constant 0 : index
    %1 = vector.load %arg4[%c0_1, %c0_2] : memref<128x256xbf16, #tpu.memory_space<vmem>>, vector<128x256xbf16>
    %cst = arith.constant dense<0.000000e+00> : vector<32x256xf32>
    %2 = tpu.matmul %0, %1, %cst {dimension_numbers = #tpu.dot_dimension_numbers<[1], [0], [0], [1], [0, 0, 1, 1], [], []>} : vector<32x128xbf16>, vector<128x256xbf16>, vector<32x256xf32> -> vector<32x256xf32>
    %c0_3 = arith.constant 0 : index
    %c0_4 = arith.constant 0 : index
    %3 = vector.load %arg5[%c0_3, %c0_4] : memref<1x256xf32, #tpu.memory_space<vmem>>, vector<1x256xf32>
    %4 = vector.broadcast %3 : vector<1x256xf32> to vector<32x256xf32>
    %5 = arith.addf %2, %4 : vector<32x256xf32>
    %c0_5 = arith.constant 0 : index
    %c0_6 = arith.constant 0 : index
    %6 = vector.load %arg6[%c0_5, %c0_6] : memref<32x256xbf16, #tpu.memory_space<vmem>>, vector<32x256xbf16>
    %7 = arith.extf %6 : vector<32x256xbf16> to vector<32x256xf32>
    %8 = arith.addf %5, %7 : vector<32x256xf32>
    %cst_7 = arith.constant 0.000000e+00 : f32
    %9 = vector.broadcast %cst_7 : f32 to vector<32x256xf32>
    %10 = arith.maximumf %8, %9 : vector<32x256xf32>
    %11 = arith.truncf %10 : vector<32x256xf32> to vector<32x256xbf16>
    %c0_8 = arith.constant 0 : index
    %c0_9 = arith.constant 0 : index
    %12 = vector.load %arg7[%c0_8, %c0_9] : memref<32x256xbf16, #tpu.memory_space<vmem>>, vector<32x256xbf16>
    tpu.vector_store %arg7[%c0_8, %c0_9], %11 {strides = array<i32>} : memref<32x256xbf16, #tpu.memory_space<vmem>>, vector<32x256xbf16>,
    return
  }
  func.func @transform_0(%arg0: i32, %arg1: i32, %arg2: i32) -> (i32, i32) {
    %c0_i32 = arith.constant 0 : i32
    return %arg0, %arg2 : i32, i32
  }
  func.func @transform_1(%arg0: i32, %arg1: i32, %arg2: i32) -> (i32, i32) {
    %c0_i32 = arith.constant 0 : i32
    return %arg2, %arg1 : i32, i32
  }
  func.func @transform_2(%arg0: i32, %arg1: i32, %arg2: i32) -> (i32, i32) {
    %c0_i32 = arith.constant 0 : i32
    %c0_i32_0 = arith.constant 0 : i32
    return %c0_i32, %arg1 : i32, i32
  }
  func.func @transform_3(%arg0: i32, %arg1: i32, %arg2: i32) -> (i32, i32) {
    %c0_i32 = arith.constant 0 : i32
    return %arg0, %arg1 : i32, i32
  }
  func.func @transform_4(%arg0: i32, %arg1: i32, %arg2: i32) -> (i32, i32) {
    %c0_i32 = arith.constant 0 : i32
    return %arg0, %arg1 : i32, i32
  }
}

</mosaic_0001>

<bundles_post_ra>
// kernel: tpu_custom_call.1
= control target key start
LH: loop header
LB: loop body
LE: loop exit
PB: predicated region body
PF: predicated region fallthrough
CT: control target
= control target key end

     0   :  { %9 = vsyncpa [#allocation3], 0  ;;  %s593_s0 = inlined_call_operand.hbm [shape: bf16[32,128], index: 0, kind: input, shape index: {}]   ;;  %s594_s1 = inlined_call_operand.hbm [shape: bf16[128,256], index: 1, kind: input, shape index: {}]   ;;  %s595_s2 = inlined_call_operand.hbm [shape: f32[1,256], index: 2, kind: input, shape index: {}]   ;;  %s596_s3 = inlined_call_operand.hbm [shape: bf16[32,256], index: 3, kind: input, shape index: {}]   ;;  %s597_s4 = inlined_call_operand.hbm [shape: bf16[32,256], index: 4, kind: output, shape index: {}]  }
   0x1   :  { %10 = vsyncpa [#allocation6], 0 }
   0x2   :  { %11 = vsyncpa [#allocation9], 0  ;;  %s30_s17 = sshll.u32 %s594_s1, 4  ;;  %s31_s17 = int_to_ptr.hbm [resolvable:$true] %s30_s17 }
   0x3   :  { %12 = vsyncpa [#allocation4], 0  ;;  %s535_s18 = smov [#allocation5]   ;;  %s17_s22 = sshll.u32 %s593_s0, 4  ;;  %s18_s22 = int_to_ptr.hbm [resolvable:$true] %s17_s22 }
   0x4   :  { %s32_s19 = sshll.u32 %s535_s18, 4  ;;  %s536_s23 = smov 128   ;;  %s33_s19 = int_to_ptr.vmem [resolvable:$true] %s32_s19 }
   0x5   :  { %s537_s24 = smov 8   ;;  %s538_s25 = smov [#allocation2]  }
   0x6   :  { %38 = dma.hbm_to_vmem [thread:$0]  %s31_s17, 2048, %s33_s19, [#allocation6], %s536_s23, %s536_s23, %s537_s24  }
   0x7   :  { %s19_s26 = sshll.u32 %s538_s25, 4  ;;  %s539_s1 = smov 64   ;;  %s20_s26 = int_to_ptr.vmem [resolvable:$true] %s19_s26 }
   0x8   :  { %s540_s27 = smov 4   ;;  %s44_s30 = sshll.u32 %s595_s2, 4  ;;  %s45_s30 = int_to_ptr.hbm [resolvable:$true] %s44_s30 }
   0x9   :  { %25 = dma.hbm_to_vmem [thread:$0]  %s18_s22, 256, %s20_s26, [#allocation3], %s539_s1, %s539_s1, %s540_s27  }
   0xa   :  { %s541_s5 = smov [#allocation7]   ;;  %s54_s8 = sshll.u32 %s596_s3, 4  ;;  %s55_s8 = int_to_ptr.hbm [resolvable:$true] %s54_s8 }
   0xb   :  { %s46_s0 = sshll.u32 %s541_s5, 4  ;;  %s542_s9 = smov [#allocation8]   ;;  %s47_s0 = int_to_ptr.vmem [resolvable:$true] %s46_s0 }
   0xc   :  { %49 = dma.hbm_to_vmem [thread:$0]  %s45_s30, 32, %s47_s0, [#allocation6]  }
   0xd   :  { %s56_s10 = sshll.u32 %s542_s9, 4  ;;  %s57_s10 = int_to_ptr.vmem [resolvable:$true] %s56_s10 }
   0xe   :  { %62 = dma.hbm_to_vmem [thread:$0]  %s55_s8, 512, %s57_s10, [#allocation9], %s536_s23, %s536_s23, %s537_s24  }
   0xf   :  { %527 = dma.done.wait [#allocation3], 256  }
  0x10   :  { %528 = vsyncadd [#allocation3], 4294967040 }
  0x11   :  { %529 = dma.done.wait [#allocation6], 2080  }
  0x12   :  { %530 = vsyncadd [#allocation6], 4294965216 }
  0x13   :  { %531 = dma.done.wait [#allocation9], 512  }
  0x14   :  { %532 = vsyncadd [#allocation9], 4294966784  ;;  %v358_v0 = vld [vmem:[#allocation5 + $0x70] sm:$0xf]  ;;  %v381_v1 = vld [vmem:[#allocation5 + $0x74] sm:$0xf0] }
  0x15   :  { %v380_v2 = vld [vmem:[#allocation5 + $0x74] sm:$0xf]  ;;  %v359_v3 = vor.u32 %v381_v1, %v358_v0  ;;  %v360_v4 = vld [vmem:[#allocation5 + $0x78] sm:$0xf0]  ;;  %v350_v5 = vld [vmem:[#allocation5 + $0x60] sm:$0xf] }
  0x16   :  { %v379_v6 = vld [vmem:[#allocation5 + $0x64] sm:$0xf0]  ;;  %v363_v7 = vor.u32 %v380_v2, %v360_v4  ;;  %v378_v8 = vld [vmem:[#allocation5 + $0x64] sm:$0xf]  ;;  %v352_v9 = vld [vmem:[#allocation5 + $0x68] sm:$0xf0] }
  0x17   :  { %197 = vmatpush.bf16.msra.mxu0 %v359_v3  ;;  %382 = vmatpush.bf16.msra.mxu2 %v359_v3  ;;  %v351_v10 = vor.u32 %v379_v6, %v350_v5  ;;  %v355_v11 = vor.u32 %v378_v8, %v352_v9  ;;  %v342_v12 = vld [vmem:[#allocation5 + $0x50] sm:$0xf]  ;;  %v377_v13 = vld [vmem:[#allocation5 + $0x54] sm:$0xf0]  ;;  %v376_v14 = vld [vmem:[#allocation5 + $0x54] sm:$0xf] }
  0x18   :  { %216 = vmatpush.bf16.msra.mxu1 %v363_v7  ;;  %390 = vmatpush.bf16.msra.mxu3 %v363_v7  ;;  %v344_v15 = vld [vmem:[#allocation5 + $0x58] sm:$0xf0]  ;;  %v343_v16 = vor.u32 %v377_v13, %v342_v12  ;;  %v334_v18 = vld [vmem:[#allocation5 + $0x40] sm:$0xf]  ;;  %v375_v19 = vld [vmem:[#allocation5 + $0x44] sm:$0xf0] }
  0x19   :  { %v347_v17 = vor.u32 %v376_v14, %v344_v15  ;;  %v374_v20 = vld [vmem:[#allocation5 + $0x44] sm:$0xf]  ;;  %v336_v21 = vld [vmem:[#allocation5 + $0x48] sm:$0xf0]  ;;  %v335_v22 = vor.u32 %v375_v19, %v334_v18  ;;  %v326_v24 = vld [vmem:[#allocation5 + $0x30] sm:$0xf] }
  0x1a   :  { %v339_v23 = vor.u32 %v374_v20, %v336_v21  ;;  %v373_v25 = vld [vmem:[#allocation5 + $0x34] sm:$0xf0]  ;;  %v372_v26 = vld [vmem:[#allocation5 + $0x34] sm:$0xf]  ;;  %v328_v27 = vld [vmem:[#allocation5 + $0x38] sm:$0xf0] }
  0x1b   :  { %198 = vmatpush.bf16.msra.mxu0 %v351_v10  ;;  %383 = vmatpush.bf16.msra.mxu2 %v351_v10  ;;  %v327_v28 = vor.u32 %v373_v25, %v326_v24  ;;  %v331_v29 = vor.u32 %v372_v26, %v328_v27  ;;  %v318_v30 = vld [vmem:[#allocation5 + $0x20] sm:$0xf]  ;;  %v371_v31 = vld [vmem:[#allocation5 + $0x24] sm:$0xf0]  ;;  %v370_v32 = vld [vmem:[#allocation5 + $0x24] sm:$0xf] }
  0x1c   :  { %217 = vmatpush.bf16.msra.mxu1 %v355_v11  ;;  %391 = vmatpush.bf16.msra.mxu3 %v355_v11  ;;  %v320_v33 = vld [vmem:[#allocation5 + $0x28] sm:$0xf0]  ;;  %v319_v34 = vor.u32 %v371_v31, %v318_v30  ;;  %v310_v36 = vld [vmem:[#allocation5 + $0x10] sm:$0xf]  ;;  %v369_v37 = vld [vmem:[#allocation5 + $0x14] sm:$0xf0] }
  0x1d   :  { %v323_v35 = vor.u32 %v370_v32, %v320_v33  ;;  %v368_v38 = vld [vmem:[#allocation5 + $0x14] sm:$0xf]  ;;  %v312_v39 = vld [vmem:[#allocation5 + $0x18] sm:$0xf0]  ;;  %v311_v40 = vor.u32 %v369_v37, %v310_v36  ;;  %v302_v42 = vld [vmem:[#allocation5] sm:$0xf] }
  0x1e   :  { %v315_v41 = vor.u32 %v368_v38, %v312_v39  ;;  %v367_v43 = vld [vmem:[#allocation5 + $0x4] sm:$0xf0]  ;;  %v366_v44 = vld [vmem:[#allocation5 + $0x4] sm:$0xf]  ;;  %v304_v45 = vld [vmem:[#allocation5 + $0x8] sm:$0xf0] }
  0x1f   :  { %199 = vmatpush.bf16.msra.mxu0 %v343_v16  ;;  %384 = vmatpush.bf16.msra.mxu2 %v343_v16  ;;  %v303_v46 = vor.u32 %v367_v43, %v302_v42  ;;  %v307_v47 = vor.u32 %v366_v44, %v304_v45  ;;  %v364_v48 = vld [vmem:[#allocation2] sm:$0xff]  ;;  %v365_v49 = vld [vmem:[#allocation2 + $0x8] sm:$0xff]  ;;  %v99_v50 = vld [vmem:[#allocation7] sm:$0x3]  ;;  %s543_s2 = smov [#allocation10]   ;;  %s277_s13 = sshll.u32 %s597_s4, 4  ;;  %s278_s13 = int_to_ptr.hbm [resolvable:$true] %s277_s13 }
  0x20   :  { %218 = vmatpush.bf16.msra.mxu1 %v347_v17  ;;  %392 = vmatpush.bf16.msra.mxu3 %v347_v17  ;;  %v235_v51 = vld [vmem:[#allocation8] sm:$0xff]  ;;  %v101_v52 = vperm.slane %v99_v50, 0  ;;  %v102_v53 = vperm.slane %v99_v50, 1  ;;  %v237_v60 = vld [vmem:[#allocation8 + $0x10] sm:$0xff]  ;;  %v236_v63 = vld [vmem:[#allocation8 + $0x8] sm:$0xff]  ;;  %s275_s3 = sshll.u32 %s543_s2, 4  ;;  %s276_s3 = int_to_ptr.vmem [resolvable:$true] %s275_s3 }
  0x21   :  { %v239_v54 = vunpack.c.l.bf16 %v235_v51  ;;  %v240_v56 = vunpack.c.h.bf16 %v235_v51  ;;  %v243_v1 = vunpack.c.l.bf16 %v237_v60  ;;  %v244_v4 = vunpack.c.h.bf16 %v237_v60  ;;  %v238_v17 = vld [vmem:[#allocation8 + $0x18] sm:$0xff] }
  0x22   :  { %v241_v7 = vunpack.c.l.bf16 %v236_v63  ;;  %v242_v11 = vunpack.c.h.bf16 %v236_v63  ;;  %v246_v27 = vunpack.c.h.bf16 %v238_v17 }
  0x23   :  { %200 = vmatpush.bf16.msra.mxu0 %v335_v22  ;;  %385 = vmatpush.bf16.msra.mxu2 %v335_v22 }
  0x24   :  { %219 = vmatpush.bf16.msra.mxu1 %v339_v23  ;;  %393 = vmatpush.bf16.msra.mxu3 %v339_v23  ;;  %v245_v23 = vunpack.c.l.bf16 %v238_v17 }
  0x27   :  { %201 = vmatpush.bf16.msra.mxu0 %v327_v28  ;;  %386 = vmatpush.bf16.msra.mxu2 %v327_v28 }
  0x28   :  { %220 = vmatpush.bf16.msra.mxu1 %v331_v29  ;;  %394 = vmatpush.bf16.msra.mxu3 %v331_v29 }
  0x2b   :  { %202 = vmatpush.bf16.msra.mxu0 %v319_v34  ;;  %387 = vmatpush.bf16.msra.mxu2 %v319_v34 }
  0x2c   :  { %221 = vmatpush.bf16.msra.mxu1 %v323_v35  ;;  %395 = vmatpush.bf16.msra.mxu3 %v323_v35 }
  0x2f   :  { %203 = vmatpush.bf16.msra.mxu0 %v311_v40  ;;  %388 = vmatpush.bf16.msra.mxu2 %v311_v40 }
  0x30   :  { %222 = vmatpush.bf16.msra.mxu1 %v315_v41  ;;  %396 = vmatpush.bf16.msra.mxu3 %v315_v41 }
  0x33   :  { %204 = vmatpush.bf16.msra.mxu0 %v303_v46  ;;  %389 = vmatpush.bf16.msra.mxu2 %v303_v46 }
  0x34   :  { %223 = vmatpush.bf16.msra.mxu1 %v307_v47  ;;  %397 = vmatpush.bf16.msra.mxu3 %v307_v47 }
  0x36   :  { %205 = vmatmul.bf16.vlgmr.msra.gmra.mxu0 %v364_v48  ;;  %210 = vmatmul.bf16.vlgmr.msra.gmra.mxu2 %v365_v49 }
  0x37   :  { %224 = vmatmul.bf16.vlgmr.msra.gmra.mxu1 %v364_v48  ;;  %229 = vmatmul.bf16.vlgmr.msra.gmra.mxu3 %v365_v49 }
  0xb3   :  { %v206_v55 = vpop.f32.mrf.mxu0 }
  0xb4   :  { %v207_v57 = vadd.f32 %v206_v55, %v101_v52  ;;  %v225_v58 = vpop.f32.mrf.mxu1 }
  0xb5   :  { %v226_v59 = vadd.f32 %v225_v58, %v102_v53 }
  0xb6   :  { %v247_v61 = vadd.f32 %v239_v54, %v207_v57 }
  0xb7   :  { %v248_v62 = vadd.f32 %v240_v56, %v226_v59 }
  0xb8   :  { %v255_v0 = vmax.f32 %v247_v61, 0.0 }
  0xb9   :  { %v256_v2 = vmax.f32 %v248_v62, 0.0  ;;  %v211_v3 = vpop.f32.mrf.mxu2 }
  0xba   :  { %v212_v5 = vadd.f32 %v211_v3, %v101_v52  ;;  %v230_v6 = vpop.f32.mrf.mxu3 }
  0xbb   :  { %v263_v8 = vpack.c.bf16 %v256_v2, %v255_v0  ;;  %v231_v9 = vadd.f32 %v230_v6, %v102_v53  ;;  %v208_v10 = vpop.f32.mrf.mxu0 }
  0xbc   :  { %v251_v12 = vadd.f32 %v243_v1, %v212_v5  ;;  %v209_v13 = vadd.f32 %v208_v10, %v101_v52  ;;  %v227_v14 = vpop.f32.mrf.mxu1 }
  0xbd   :  { %267 = vst [vmem:[#allocation10] sm:$0xff] %v263_v8  ;;  %v252_v15 = vadd.f32 %v244_v4, %v231_v9  ;;  %v228_v16 = vadd.f32 %v227_v14, %v102_v53 }
  0xbe   :  { %v259_v18 = vmax.f32 %v251_v12, 0.0  ;;  %v249_v19 = vadd.f32 %v241_v7, %v209_v13 }
  0xbf   :  { %v260_v20 = vmax.f32 %v252_v15, 0.0  ;;  %v250_v21 = vadd.f32 %v242_v11, %v228_v16 }
  0xc0   :  { %v257_v22 = vmax.f32 %v249_v19, 0.0 }
  0xc1   :  { %v265_v24 = vpack.c.bf16 %v260_v20, %v259_v18  ;;  %v258_v25 = vmax.f32 %v250_v21, 0.0  ;;  %v213_v26 = vpop.f32.mrf.mxu2 }
  0xc2   :  { %v214_v28 = vadd.f32 %v213_v26, %v101_v52  ;;  %v232_v29 = vpop.f32.mrf.mxu3 }
  0xc3   :  { %269 = vst [vmem:[#allocation10 + $0x10] sm:$0xff] %v265_v24  ;;  %v264_v30 = vpack.c.bf16 %v258_v25, %v257_v22  ;;  %v233_v31 = vadd.f32 %v232_v29, %v102_v53 }
  0xc4   :  { %v253_v32 = vadd.f32 %v245_v23, %v214_v28 }
  0xc5   :  { %268 = vst [vmem:[#allocation10 + $0x8] sm:$0xff] %v264_v30  ;;  %v254_v33 = vadd.f32 %v246_v27, %v233_v31 }
  0xc6   :  { %v261_v34 = vmax.f32 %v253_v32, 0.0 }
  0xc7   :  { %v262_v35 = vmax.f32 %v254_v33, 0.0 }
  0xc9   :  { %v266_v36 = vpack.c.bf16 %v262_v35, %v261_v34 }
  0xcb   :  { %270 = vst [vmem:[#allocation10 + $0x18] sm:$0xff] %v266_v36 }
  0xcc   :  { %283 = dma.vmem_to_hbm [thread:$0]  %s276_s3, 512, %s278_s13, [#allocation4], %s536_s23, %s536_s23, %s537_s24  }
  0xcd   :  { %533 = dma.done.wait [#allocation4], 512  }
  0xce   :  { %534 = vsyncadd [#allocation4], 4294966784 }
  0xcf   :  { %288 = vsyncpa [#allocation3], 1 }
  0xd0   :  { %289 = vsyncpa [#allocation6], 1 }
  0xd1   :  { %290 = vsyncpa [#allocation9], 1 }
  0xd2   :  { %291 = vsyncpa [#allocation4], 1 }

</bundles_post_ra>
